<compile_context>
chip_gen: v7x
topology: tpu7x:2x2x1
jax: 0.10.0
libtpu: 0.0.40
codegen_flags: <defaults>
</compile_context>

<pallas_src>
import functools
import math

import jax
import jax.numpy as jnp
from jax.experimental import pallas as pl
from jax.experimental.pallas import tpu as pltpu

_MIB = 1024 * 1024
_LANE = 128
_SUBLANE = 8


def _round_up(n, m):
    return ((n + m - 1) // m) * m


def _gelu_tanh(x):
    # nn.GELU(approximate='tanh'); python-float constants keep x's dtype.
    c = math.sqrt(2.0 / math.pi)
    return 0.5 * x * (1.0 + jnp.tanh(c * (x + 0.044715 * x * x * x)))


# -----------------------------------------------------------------------------
# Chip / capability detection (trace-time only; never masks kernel errors).
# -----------------------------------------------------------------------------
@functools.lru_cache(maxsize=None)
def _chip_info():
    """Best-effort (chip kind, physical VMEM bytes per core)."""
    kind, vmem = "unknown", 64 * _MIB          # conservative: v7x has least VMEM
    try:
        info = pltpu.get_tpu_info()
        vmem = int(getattr(info, "vmem_capacity_bytes", 0) or vmem)
        name = " ".join(str(getattr(info, a, "")) for a in
                        ("chip_version", "version", "chip_name", "name")).lower()
    except Exception:                          # detection only; safe defaults
        return kind, vmem
    if "v5e" in name or "5 lite" in name or "5lite" in name:
        kind = "v5e"
    elif "v6" in name:
        kind = "v6e"
    elif "v7" in name:
        kind = "v7x"
    elif vmem <= 64 * _MIB:
        kind = "v7x"
    return kind, vmem


@functools.lru_cache(maxsize=None)
def _buffered_supported():
    """One-shot capability probe for BlockSpec(pipeline_mode=pl.Buffered(n)).

    Probes a trivial copy kernel, so genuine compile/VMEM failures of the MLP
    kernel itself are never masked by a broad try/except.
    """
    if not hasattr(pl, "Buffered"):
        return False

    def _copy(x_ref, o_ref):
        o_ref[...] = x_ref[...]

    try:
        x = jnp.zeros((_SUBLANE, _LANE), jnp.float32)
        out = pl.pallas_call(
            _copy,
            out_shape=jax.ShapeDtypeStruct((_SUBLANE, _LANE), jnp.float32),
            grid=(1,),
            in_specs=[pl.BlockSpec((_SUBLANE, _LANE), lambda i: (0, 0),
                                   pipeline_mode=pl.Buffered(1))],
            out_specs=pl.BlockSpec((_SUBLANE, _LANE), lambda i: (0, 0)),
        )(x)
        jax.block_until_ready(out)
        return True
    except Exception:
        return False


def _spec(shape, index_map, buffers):
    """BlockSpec with explicit buffer count when supported (else default)."""
    if buffers is not None and _buffered_supported():
        return pl.BlockSpec(shape, index_map, pipeline_mode=pl.Buffered(buffers))
    return pl.BlockSpec(shape, index_map)


# -----------------------------------------------------------------------------
# Kernels
# -----------------------------------------------------------------------------
def _mlp_resident_kernel(x_ref, w1_ref, w2_ref, o_ref, *, gelu_dtype):
    # fc1 on the MXU, f32 accumulation.
    h = jnp.dot(x_ref[...], w1_ref[...], preferred_element_type=jnp.float32)
    # GELU(tanh): bf16 on v6e/v7x (bf16 VPU/EUP), f32 on v5e/unknown.
    h = _gelu_tanh(h.astype(gelu_dtype)).astype(w2_ref.dtype)
    # fc2 on the MXU, f32 accumulation.
    o_ref[...] = jnp.dot(h, w2_ref[...],
                         preferred_element_type=jnp.float32).astype(o_ref.dtype)


def _mlp_streaming_kernel(x_ref, w1_ref, w2_ref, o_ref, acc_ref, *, gelu_dtype):
    # H-tiled accumulate path: grid = (row tiles, H tiles), H axis last.
    k = pl.program_id(1)

    @pl.when(k == 0)
    def _():
        acc_ref[...] = jnp.zeros_like(acc_ref)

    h = jnp.dot(x_ref[...], w1_ref[...], preferred_element_type=jnp.float32)
    h = _gelu_tanh(h.astype(gelu_dtype)).astype(w2_ref.dtype)
    acc_ref[...] += jnp.dot(h, w2_ref[...], preferred_element_type=jnp.float32)

    @pl.when(k == pl.num_programs(1) - 1)
    def _():
        o_ref[...] = acc_ref[...].astype(o_ref.dtype)


# -----------------------------------------------------------------------------
# Wrapper
# -----------------------------------------------------------------------------
def prepare_mlp_weights(w1, w2, compute_dtype=jnp.bfloat16):
    """Pad dims up to lane multiples and cast once, OUTSIDE the hot path.

    w1: (C, H) == fc1.weight.T ;  w2: (H, O) == fc2.weight.T
    """
    C, H = w1.shape
    H2, O = w2.shape
    assert H2 == H, "fc1/fc2 hidden dims disagree"
    Cp, Hp, Op = (_round_up(d, _LANE) for d in (C, H, O))
    w1p = jnp.pad(w1, ((0, Cp - C), (0, Hp - H))).astype(compute_dtype)
    w2p = jnp.pad(w2, ((0, Hp - H), (0, Op - O))).astype(compute_dtype)
    return w1p, w2p, (C, H, O)


def mlp_forward(x, prepared, *, tile_m=None, tile_h=None,
                out_dtype=None, compute_dtype=jnp.bfloat16):
    """y = gelu_tanh(x @ w1) @ w2, weights from prepare_mlp_weights()."""
    w1p, w2p, (C, H, O) = prepared
    Cp, Hp = w1p.shape
    Op = w2p.shape[1]
    assert x.shape[-1] == C

    *lead, _ = x.shape
    M = 1
    for d in lead:
        M *= d
    out_dtype = jnp.dtype(out_dtype or x.dtype)
    op_isz = jnp.dtype(compute_dtype).itemsize
    out_isz = out_dtype.itemsize

    chip, vmem_phys = _chip_info()
    vmem_budget = int(vmem_phys * 0.75)          # headroom for compiler scratch
    gelu_dtype = jnp.bfloat16 if chip in ("v6e", "v7x") else jnp.float32

    # Activations: cast + cheap pads only (C to lane, <=7 rows to sublane).
    M8 = _round_up(max(M, _SUBLANE), _SUBLANE)
    x2 = x.reshape(M, C)
    if M8 != M or Cp != C:
        x2 = jnp.pad(x2, ((0, M8 - M), (0, Cp - C)))
    xp = x2.astype(compute_dtype)

    # Per-chip row tiles.
    if tile_m is not None:
        tm_res = tm_str = min(_round_up(tile_m, _SUBLANE), M8)
    else:
        tm_res = min({"v5e": 128}.get(chip, 256), M8)
        tm_str = min({"v5e": 128, "v6e": 512, "v7x": 256}.get(chip, 256), M8)

    res_w_bufs = 1 if _buffered_supported() else 2   # resident-weight buffers
    nbuf_w = 2                                       # streamed weight tiles

    def resident_bytes(tm_):
        return (2 * tm_ * Cp * op_isz               # x row tile (double buffered)
                + res_w_bufs * Cp * Hp * op_isz     # w1 resident
                + res_w_bufs * Hp * Op * op_isz     # w2 resident
                + 2 * tm_ * Op * out_isz            # output tile (double buffered)
                + tm_ * Hp * 6)                     # f32 h + bf16 copy

    def streamed_bytes(tm_, th_):
        return (2 * tm_ * Cp * op_isz
                + nbuf_w * Cp * th_ * op_isz        # streamed w1 tile
                + nbuf_w * th_ * Op * op_isz        # streamed w2 tile
                + 2 * tm_ * Op * out_isz
                + tm_ * Op * 4                      # f32 accumulator scratch
                + tm_ * th_ * 6)                    # f32 h + bf16 copy

    use_streaming = (tile_h is not None) or (resident_bytes(tm_res) > vmem_budget)

    cost = pl.CostEstimate(
        flops=2 * M8 * (Cp * Hp + Hp * Op),
        transcendentals=M8 * Hp,
        bytes_accessed=(xp.size + w1p.size + w2p.size) * op_isz + M8 * Op * out_isz,
    )
    kernel_out = jax.ShapeDtypeStruct((M8, Op), out_dtype)

    if not use_streaming:
        tm = tm_res
        usage = resident_bytes(tm)
        vmem_limit = int(min(max(usage * 5 // 4 + 4 * _MIB, 32 * _MIB), vmem_phys))
        out = pl.pallas_call(
            functools.partial(_mlp_resident_kernel, gelu_dtype=gelu_dtype),
            out_shape=kernel_out,
            grid_spec=pltpu.PrefetchScalarGridSpec(
                num_scalar_prefetch=0,
                grid=(pl.cdiv(M8, tm),),
                in_specs=[
                    pl.BlockSpec((tm, Cp), lambda i: (i, 0)),            # x tile
                    _spec((Cp, Hp), lambda i: (0, 0), buffers=1),        # w1 resident
                    _spec((Hp, Op), lambda i: (0, 0), buffers=1),        # w2 resident
                ],
                out_specs=pl.BlockSpec((tm, Op), lambda i: (i, 0)),      # lane-dense
            ),
            compiler_params=pltpu.CompilerParams(
                dimension_semantics=("parallel",),
                vmem_limit_bytes=vmem_limit,
            ),
            cost_estimate=cost,
        )(xp, w1p, w2p)
    else:
        tm = tm_str
        if tile_h is not None:
            th = tile_h
            assert th % _LANE == 0 and Hp % th == 0, \
                "tile_h must be a multiple of 128 that divides the padded hidden dim"
        else:
            # Largest H tile (multiple of 128 dividing Hp) fitting the budget.
            cands = sorted({Hp // k for k in range(1, Hp // _LANE + 1)
                            if Hp % k == 0 and (Hp // k) % _LANE == 0},
                           reverse=True)
            th = cands[-1]                            # 128 always present
            for c in cands:
                if streamed_bytes(tm, c) <= vmem_budget:
                    th = c
                    break
            while tm > _SUBLANE and streamed_bytes(tm, th) > vmem_budget:
                tm = _round_up(tm // 2, _SUBLANE)
        usage = streamed_bytes(tm, th)
        vmem_limit = int(min(max(usage * 5 // 4 + 4 * _MIB, 32 * _MIB), vmem_phys))
        out = pl.pallas_call(
            functools.partial(_mlp_streaming_kernel, gelu_dtype=gelu_dtype),
            out_shape=kernel_out,
            grid_spec=pltpu.PrefetchScalarGridSpec(
                num_scalar_prefetch=0,
                grid=(pl.cdiv(M8, tm), Hp // th),       # reduction (H) axis last
                in_specs=[
                    pl.BlockSpec((tm, Cp), lambda i, k: (i, 0)),         # x tile
                    _spec((Cp, th), lambda i, k: (0, k), buffers=nbuf_w),  # w1 tile
                    _spec((th, Op), lambda i, k: (k, 0), buffers=nbuf_w),  # w2 tile
                ],
                out_specs=pl.BlockSpec((tm, Op), lambda i, k: (i, 0)),
                scratch_shapes=[pltpu.VMEM((tm, Op), jnp.float32)],       # f32 acc
            ),
            compiler_params=pltpu.CompilerParams(
                dimension_semantics=("parallel", "arbitrary"),
                vmem_limit_bytes=vmem_limit,
            ),
            cost_estimate=cost,
        )(xp, w1p, w2p)

    return out[:M, :O].reshape(*lead, O)


def mlp_ref(x, w1, w2, compute_dtype=jnp.bfloat16):
    """Pure-JAX reference (bf16 matmul operands, f32 accumulation, f32 GELU)."""
    h = jnp.dot(x.astype(compute_dtype), w1.astype(compute_dtype),
                preferred_element_type=jnp.float32)
    h = _gelu_tanh(h)
    y = jnp.dot(h.astype(compute_dtype), w2.astype(compute_dtype),
                preferred_element_type=jnp.float32)
    return y.astype(x.dtype)


if __name__ == "__main__":
    key = jax.random.PRNGKey(0)
    kx, k1, k2, k3, k4 = jax.random.split(key, 5)

    # Small shapes consistent with the module: batch=2, seq=8,
    # in_features=32, hidden_features=64, out_features=32.
    B, T, C, H, O = 2, 8, 32, 64, 32
    x = jax.random.normal(kx, (B, T, C), dtype=jnp.float32)
    # nn.Linear (bias=False) weights, stored as (in, out) so y = x @ W.
    w1 = jax.random.normal(k1, (C, H), dtype=jnp.float32) / math.sqrt(C)
    w2 = jax.random.normal(k2, (H, O), dtype=jnp.float32) / math.sqrt(H)

    prepared = prepare_mlp_weights(w1, w2)     # pad + cast once, off the hot path

    # Resident-weight path (weights fit VMEM at this size).
    out = jax.block_until_ready(mlp_forward(x, prepared))
    ref = mlp_ref(x, w1, w2)
    assert out.shape == (B, T, O)
    err = float(jnp.max(jnp.abs(out - ref)))
    assert jnp.allclose(out, ref, atol=2e-2, rtol=2e-2), f"resident path err {err}"

    # H-tiled streaming/accumulate path (the one used when weights don't fit
    # VMEM), forced with a small hidden tile so accumulation is exercised.
    H2 = 256
    w1b = jax.random.normal(k3, (C, H2), dtype=jnp.float32) / math.sqrt(C)
    w2b = jax.random.normal(k4, (H2, O), dtype=jnp.float32) / math.sqrt(H2)
    prepared_b = prepare_mlp_weights(w1b, w2b)
    out_s = jax.block_until_ready(mlp_forward(x, prepared_b, tile_h=128))
    ref_s = mlp_ref(x, w1b, w2b)
    err_s = float(jnp.max(jnp.abs(out_s - ref_s)))
    assert out_s.shape == (B, T, O)
    assert jnp.allclose(out_s, ref_s, atol=2e-2, rtol=2e-2), f"streaming path err {err_s}"

    print("KERNEL_OK")
</pallas_src>

<mosaic_0001>
module attributes {stable_mosaic.version = 11 : i64} {
  func.func @_copy(%arg0: i32, %arg1: memref<8x128xf32, #tpu.memory_space<vmem>>, %arg2: memref<8x128xf32, #tpu.memory_space<vmem>>) attributes {dimension_semantics = [#tpu.dimension_semantics<arbitrary>], iteration_bounds = array<i64: 1>, scalar_prefetch = 0 : i64, scratch_operands = 0 : i64, tpu.core_type = #tpu.core_type<tc>, window_params = [{pipeline_mode = #tpu.pipeline_mode<synchronous>, transform_indices = @transform_0, window_bounds = array<i64: 8, 128>}, {pipeline_mode = #tpu.pipeline_mode<synchronous>, transform_indices = @transform_1, window_bounds = array<i64: 8, 128>}]} {
    %c0 = arith.constant 0 : index
    %c0_0 = arith.constant 0 : index
    %0 = vector.load %arg1[%c0, %c0_0] : memref<8x128xf32, #tpu.memory_space<vmem>>, vector<8x128xf32>
    %c0_1 = arith.constant 0 : index
    %c0_2 = arith.constant 0 : index
    %1 = vector.load %arg2[%c0_1, %c0_2] : memref<8x128xf32, #tpu.memory_space<vmem>>, vector<8x128xf32>
    tpu.vector_store %arg2[%c0_1, %c0_2], %0 {strides = array<i32>} : memref<8x128xf32, #tpu.memory_space<vmem>>, vector<8x128xf32>,
    return
  }
  func.func @transform_0(%arg0: i32) -> (i32, i32) {
    %c0_i32 = arith.constant 0 : i32
    %c0_i32_0 = arith.constant 0 : i32
    %c0_i32_1 = arith.constant 0 : i32
    return %c0_i32, %c0_i32_0 : i32, i32
  }
  func.func @transform_1(%arg0: i32) -> (i32, i32) {
    %c0_i32 = arith.constant 0 : i32
    %c0_i32_0 = arith.constant 0 : i32
    %c0_i32_1 = arith.constant 0 : i32
    return %c0_i32, %c0_i32_0 : i32, i32
  }
}

module attributes {stable_mosaic.version = 11 : i64} {
  func.func @_mlp_resident_kernel(%arg0: i32, %arg1: memref<16x128xbf16, #tpu.memory_space<vmem>>, %arg2: memref<128x128xbf16, #tpu.memory_space<vmem>>, %arg3: memref<128x128xbf16, #tpu.memory_space<vmem>>, %arg4: memref<16x128xf32, #tpu.memory_space<vmem>>) attributes {dimension_semantics = [#tpu.dimension_semantics<parallel>], iteration_bounds = array<i64: 1>, scalar_prefetch = 0 : i64, scratch_operands = 0 : i64, tpu.core_type = #tpu.core_type<tc>, window_params = [{transform_indices = @transform_0, window_bounds = array<i64: 16, 128>}, {pipeline_mode = #tpu.pipeline_mode<synchronous>, transform_indices = @transform_1, window_bounds = array<i64: 128, 128>}, {pipeline_mode = #tpu.pipeline_mode<synchronous>, transform_indices = @transform_2, window_bounds = array<i64: 128, 128>}, {transform_indices = @transform_3, window_bounds = array<i64: 16, 128>}]} {
    %c0 = arith.constant 0 : index
    %c0_0 = arith.constant 0 : index
    %0 = vector.load %arg1[%c0, %c0_0] : memref<16x128xbf16, #tpu.memory_space<vmem>>, vector<16x128xbf16>
    %c0_1 = arith.constant 0 : index
    %c0_2 = arith.constant 0 : index
    %1 = vector.load %arg2[%c0_1, %c0_2] : memref<128x128xbf16, #tpu.memory_space<vmem>>, vector<128x128xbf16>
    %cst = arith.constant dense<0.000000e+00> : vector<16x128xf32>
    %2 = tpu.matmul %0, %1, %cst {dimension_numbers = #tpu.dot_dimension_numbers<[1], [0], [0], [1], [0, 0, 1, 1], [], []>} : vector<16x128xbf16>, vector<128x128xbf16>, vector<16x128xf32> -> vector<16x128xf32>
    %cst_3 = arith.constant 5.000000e-01 : f32
    %3 = vector.broadcast %cst_3 : f32 to vector<16x128xf32>
    %4 = arith.mulf %3, %2 : vector<16x128xf32>
    %cst_4 = arith.constant 4.471500e-02 : f32
    %5 = vector.broadcast %cst_4 : f32 to vector<16x128xf32>
    %6 = arith.mulf %5, %2 : vector<16x128xf32>
    %7 = arith.mulf %6, %2 : vector<16x128xf32>
    %8 = arith.mulf %7, %2 : vector<16x128xf32>
    %9 = arith.addf %2, %8 : vector<16x128xf32>
    %cst_5 = arith.constant 0.797884583 : f32
    %10 = vector.broadcast %cst_5 : f32 to vector<16x128xf32>
    %11 = arith.mulf %10, %9 : vector<16x128xf32>
    %12 = math.tanh %11 : vector<16x128xf32>
    %cst_6 = arith.constant 1.000000e+00 : f32
    %13 = vector.broadcast %cst_6 : f32 to vector<16x128xf32>
    %14 = arith.addf %13, %12 : vector<16x128xf32>
    %15 = arith.mulf %4, %14 : vector<16x128xf32>
    %16 = arith.truncf %15 : vector<16x128xf32> to vector<16x128xbf16>
    %c0_7 = arith.constant 0 : index
    %c0_8 = arith.constant 0 : index
    %17 = vector.load %arg3[%c0_7, %c0_8] : memref<128x128xbf16, #tpu.memory_space<vmem>>, vector<128x128xbf16>
    %cst_9 = arith.constant dense<0.000000e+00> : vector<16x128xf32>
    %18 = tpu.matmul %16, %17, %cst_9 {dimension_numbers = #tpu.dot_dimension_numbers<[1], [0], [0], [1], [0, 0, 1, 1], [], []>} : vector<16x128xbf16>, vector<128x128xbf16>, vector<16x128xf32> -> vector<16x128xf32>
    %c0_10 = arith.constant 0 : index
    %c0_11 = arith.constant 0 : index
    %19 = vector.load %arg4[%c0_10, %c0_11] : memref<16x128xf32, #tpu.memory_space<vmem>>, vector<16x128xf32>
    tpu.vector_store %arg4[%c0_10, %c0_11], %18 {strides = array<i32>} : memref<16x128xf32, #tpu.memory_space<vmem>>, vector<16x128xf32>,
    return
  }
  func.func @transform_0(%arg0: i32) -> (i32, i32) {
    %c0_i32 = arith.constant 0 : i32
    %c0_i32_0 = arith.constant 0 : i32
    return %arg0, %c0_i32 : i32, i32
  }
  func.func @transform_1(%arg0: i32) -> (i32, i32) {
    %c0_i32 = arith.constant 0 : i32
    %c0_i32_0 = arith.constant 0 : i32
    %c0_i32_1 = arith.constant 0 : i32
    return %c0_i32, %c0_i32_0 : i32, i32
  }
  func.func @transform_2(%arg0: i32) -> (i32, i32) {
    %c0_i32 = arith.constant 0 : i32
    %c0_i32_0 = arith.constant 0 : i32
    %c0_i32_1 = arith.constant 0 : i32
    return %c0_i32, %c0_i32_0 : i32, i32
  }
  func.func @transform_3(%arg0: i32) -> (i32, i32) {
    %c0_i32 = arith.constant 0 : i32
    %c0_i32_0 = arith.constant 0 : i32
    return %arg0, %c0_i32 : i32, i32
  }
}

</mosaic_0001>

<bundles_post_ra>
// kernel: tpu_custom_call.1
= control target key start
LH: loop header
LB: loop body
LE: loop exit
PB: predicated region body
PF: predicated region fallthrough
CT: control target
= control target key end

     0   :  { %6 = vsyncpa [#allocation3], 0  ;;  %s124_s0 = inlined_call_operand.hbm [shape: f32[8,128], index: 0, kind: input, shape index: {}]   ;;  %s125_s1 = inlined_call_operand.hbm [shape: f32[8,128], index: 1, kind: output, shape index: {}]  }
   0x1   :  { %7 = vsyncpa [#allocation4], 0  ;;  %s88_s6 = smov [#allocation2]   ;;  %s40_s10 = scalar_lea.hbm %s124_s0, 128 }
   0x2   :  { %s14_s7 = sshll.u32 %s88_s6, 4  ;;  %p41_p0 = scmp.ne.s32.totalorder %s124_s0, %s40_s10  ;;  %s15_s7 = int_to_ptr.vmem [resolvable:$true] %s14_s7 }
   0x3   :  { %p44_p1 = scmp.lt.u32.totalorder %s40_s10, %s124_s0 }
   0x5   :  { %p46_p2 = pnand %p44_p1, %p41_p0 }
   0x7   :  { %49 = shalt.err (!%p46_p2)
}
   0x8   :  { %s50_s15 = scalar_lea.vmem %s15_s7, 128  ;;  %p55_p4 = scmp.lt.s32.totalorder %s15_s7, %s15_s7 }
   0x9   :  { %p51_p3 = scmp.ne.s32.totalorder %s15_s7, %s50_s15  ;;  %p56_p5 = scmp.lt.s32.totalorder %s50_s15, %s50_s15 }
   0xb   :  { %p57_p6 = por %p56_p5, %p55_p4 }
   0xd   :  { %p58_p7 = pnand %p57_p6, %p51_p3 }
   0xf   :  { %61 = shalt.err (!%p58_p7)
}
  0x10   :  { %17 = dma.hbm_to_vmem [thread:$0]  %s124_s0, 128, %s15_s7, [#allocation3]  }
  0x11   :  { %84 = dma.done.wait [#allocation3], 128  }
  0x12   :  { %85 = vsyncadd [#allocation3], 4294967168  ;;  %s89_s18 = smov [#allocation5]   ;;  %v21_v0 = vld [vmem:[#allocation2] sm:$0xff] }
  0x13   :  { %s29_s19 = sshll.u32 %s89_s18, 4  ;;  %22 = vst [vmem:[#allocation5] sm:$0xff] %v21_v0  ;;  %s30_s19 = int_to_ptr.vmem [resolvable:$true] %s29_s19 }
  0x14   :  { %s62_s20 = scalar_lea.vmem %s30_s19, 128  ;;  %p67_p9 = scmp.lt.s32.totalorder %s30_s19, %s30_s19 }
  0x15   :  { %p63_p8 = scmp.ne.s32.totalorder %s30_s19, %s62_s20  ;;  %p68_p10 = scmp.lt.s32.totalorder %s62_s20, %s62_s20 }
  0x17   :  { %p69_p11 = por %p68_p10, %p67_p9 }
  0x19   :  { %p70_p12 = pnand %p69_p11, %p63_p8 }
  0x1b   :  { %73 = shalt.err (!%p70_p12)
}
  0x1c   :  { %s74_s23 = scalar_lea.hbm %s125_s1, 128 }
  0x1d   :  { %p75_p13 = scmp.ne.s32.totalorder %s125_s1, %s74_s23  ;;  %p78_p0 = scmp.lt.u32.totalorder %s74_s23, %s125_s1 }
  0x1f   :  { %p80_p1 = pnand %p78_p0, %p75_p13 }
  0x21   :  { %83 = shalt.err (!%p80_p1)
}
  0x22   :  { %32 = dma.vmem_to_hbm [thread:$0]  %s30_s19, 128, %s125_s1, [#allocation4]  }
  0x23   :  { %86 = dma.done.wait [#allocation4], 128  }
  0x24   :  { %87 = vsyncadd [#allocation4], 4294967168 }
  0x25   :  { %36 = vsyncpa [#allocation3], 1 }
  0x26   :  { %37 = vsyncpa [#allocation4], 1 }

// kernel: tpu_custom_call.1
= control target key start
LH: loop header
LB: loop body
LE: loop exit
PB: predicated region body
PF: predicated region fallthrough
CT: control target
= control target key end

     0   :  { %8 = vsyncpa [#allocation3], 0  ;;  %s608_s0 = inlined_call_operand.hbm [shape: bf16[16,128], index: 0, kind: input, shape index: {}]   ;;  %s609_s1 = inlined_call_operand.hbm [shape: bf16[128,128], index: 1, kind: input, shape index: {}]   ;;  %s610_s2 = inlined_call_operand.hbm [shape: bf16[128,128], index: 2, kind: input, shape index: {}]   ;;  %s611_s3 = inlined_call_operand.hbm [shape: f32[16,128], index: 3, kind: output, shape index: {}]  }
   0x1   :  { %9 = vsyncpa [#allocation6], 0 }
   0x2   :  { %10 = vsyncpa [#allocation4], 0  ;;  %s514_s12 = smov [#allocation5]   ;;  %s515_s14 = smov [#allocation2]  }
   0x3   :  { %s28_s13 = sshll.u32 %s514_s12, 4  ;;  %s16_s15 = sshll.u32 %s515_s14, 4  ;;  %s29_s13 = int_to_ptr.vmem [resolvable:$true] %s28_s13  ;;  %s544_s15 = int_to_ptr.vmem [resolvable:$true] %s16_s15 }
   0x4   :  { %s420_s18 = scalar_lea.hbm %s609_s1, 1024 }
   0x5   :  { %p421_p0 = scmp.ne.s32.totalorder %s609_s1, %s420_s18  ;;  %p424_p1 = scmp.lt.u32.totalorder %s420_s18, %s609_s1 }
   0x7   :  { %p426_p2 = pnand %p424_p1, %p421_p0 }
   0x9   :  { %429 = shalt.err (!%p426_p2)
}
   0xa   :  { %s430_s23 = scalar_lea.vmem %s29_s13, 1024  ;;  %p435_p4 = scmp.lt.s32.totalorder %s29_s13, %s29_s13 }
   0xb   :  { %p431_p3 = scmp.ne.s32.totalorder %s29_s13, %s430_s23  ;;  %p436_p5 = scmp.lt.s32.totalorder %s430_s23, %s430_s23 }
   0xd   :  { %p437_p6 = por %p436_p5, %p435_p4 }
   0xf   :  { %p438_p7 = pnand %p437_p6, %p431_p3 }
  0x11   :  { %441 = shalt.err (!%p438_p7)
}
  0x12   :  { %s516_s24 = smov 64   ;;  %s517_s25 = smov 4  }
  0x13   :  { %34 = dma.hbm_to_vmem [thread:$0]  %s609_s1, 1024, %s29_s13, [#allocation6], %s516_s24, %s516_s24, %s517_s25  }
  0x14   :  { %s442_s30 = scalar_lea.hbm %s608_s0, 128 }
  0x15   :  { %p443_p8 = scmp.ne.s32.totalorder %s608_s0, %s442_s30  ;;  %p446_p9 = scmp.lt.u32.totalorder %s442_s30, %s608_s0 }
  0x17   :  { %p448_p10 = pnand %p446_p9, %p443_p8 }
  0x19   :  { %451 = shalt.err (!%p448_p10)
}
  0x1a   :  { %s452_s8 = scalar_lea.vmem %s544_s15, 128  ;;  %p457_p12 = scmp.lt.s32.totalorder %s544_s15, %s544_s15 }
  0x1b   :  { %p453_p11 = scmp.ne.s32.totalorder %s544_s15, %s452_s8  ;;  %p458_p13 = scmp.lt.s32.totalorder %s452_s8, %s452_s8 }
  0x1d   :  { %p459_p0 = por %p458_p13, %p457_p12 }
  0x1f   :  { %p460_p1 = pnand %p459_p0, %p453_p11 }
  0x21   :  { %463 = shalt.err (!%p460_p1)
}
  0x22   :  { %22 = dma.hbm_to_vmem [thread:$0]  %s608_s0, 128, %s544_s15, [#allocation3], %s516_s24, %s516_s24, %s517_s25  }
  0x23   :  { %s518_s10 = smov [#allocation7]   ;;  %s464_s14 = scalar_lea.hbm %s610_s2, 1024 }
  0x24   :  { %s40_s11 = sshll.u32 %s518_s10, 4  ;;  %p465_p2 = scmp.ne.s32.totalorder %s610_s2, %s464_s14  ;;  %s41_s11 = int_to_ptr.vmem [resolvable:$true] %s40_s11 }
  0x25   :  { %p468_p3 = scmp.lt.u32.totalorder %s464_s14, %s610_s2 }
  0x27   :  { %p470_p4 = pnand %p468_p3, %p465_p2 }
  0x29   :  { %473 = shalt.err (!%p470_p4)
}
  0x2a   :  { %s474_s20 = scalar_lea.vmem %s41_s11, 1024  ;;  %p479_p6 = scmp.lt.s32.totalorder %s41_s11, %s41_s11 }
  0x2b   :  { %p475_p5 = scmp.ne.s32.totalorder %s41_s11, %s474_s20  ;;  %p480_p7 = scmp.lt.s32.totalorder %s474_s20, %s474_s20 }
  0x2d   :  { %p481_p8 = por %p480_p7, %p479_p6 }
  0x2f   :  { %p482_p9 = pnand %p481_p8, %p475_p5 }
  0x31   :  { %485 = shalt.err (!%p482_p9)
}
  0x32   :  { %46 = dma.hbm_to_vmem [thread:$0]  %s610_s2, 1024, %s41_s11, [#allocation6], %s516_s24, %s516_s24, %s517_s25  }
  0x33   :  { %508 = dma.done.wait [#allocation3], 128  }
  0x34   :  { %509 = vsyncadd [#allocation3], 4294967168 }
  0x35   :  { %510 = dma.done.wait [#allocation6], 2048  }
  0x36   :  { %511 = vsyncadd [#allocation6], 4294965248  ;;  %v519_v0 = vmov 0.0   ;;  %vm520_vm0 = vmmov 0   ;;  %v399_v1 = vld [vmem:[#allocation5] sm:$0xff]   ;;  %v400_v2 = vld [vmem:[#allocation5 + $0x8] sm:$0xff]  }
  0x37   :  { %349 = vmatprep.subr.bf16.mxu0 %v519_v0  ;;  %365 = vmatprep.mubr.msk.bf16.mxu0 %vm520_vm0, %v519_v0  ;;  %v401_v3 = vld [vmem:[#allocation5 + $0x10] sm:$0xff]   ;;  %v402_v4 = vld [vmem:[#allocation5 + $0x18] sm:$0xff]   ;;  %v408_v5 = vld [vmem:[#allocation7] sm:$0xff]   ;;  %s521_s2 = smov [#allocation8]  }
  0x38   :  { %369 = vmatprep.subr.bf16.mxu1 %v519_v0  ;;  %385 = vmatprep.mubr.msk.bf16.mxu1 %vm520_vm0, %v519_v0  ;;  %v403_v6 = vld [vmem:[#allocation5 + $0x20] sm:$0xff]   ;;  %v404_v7 = vld [vmem:[#allocation5 + $0x28] sm:$0xff]   ;;  %v405_v8 = vld [vmem:[#allocation5 + $0x30] sm:$0xff]   ;;  %s301_s21 = sshll.u32 %s521_s2, 4  ;;  %s302_s21 = int_to_ptr.vmem [resolvable:$true] %s301_s21 }
  0x39   :  { %350 = vmatpush3.bf16.msra.mxu0 %v399_v1  ;;  %370 = vmatpush3.bf16.msra.mxu1 %v408_v5  ;;  %v406_v9 = vld [vmem:[#allocation5 + $0x38] sm:$0xff]   ;;  %v409_v11 = vld [vmem:[#allocation7 + $0x8] sm:$0xff]   ;;  %v410_v12 = vld [vmem:[#allocation7 + $0x10] sm:$0xff]   ;;  %s486_s22 = scalar_lea.vmem %s302_s21, 256  ;;  %p491_p11 = scmp.lt.s32.totalorder %s302_s21, %s302_s21 }
  0x3a   :  { %351 = vmatprep.subr.bf16.mxu0 %v519_v0  ;;  %371 = vmatprep.subr.bf16.mxu1 %v519_v0  ;;  %v407_v10 = vld [vmem:[#allocation2] sm:$0xff]   ;;  %v412_v14 = vld [vmem:[#allocation7 + $0x20] sm:$0xff]   ;;  %v413_v15 = vld [vmem:[#allocation7 + $0x28] sm:$0xff]   ;;  %p487_p10 = scmp.ne.s32.totalorder %s302_s21, %s486_s22  ;;  %p492_p12 = scmp.lt.s32.totalorder %s486_s22, %s486_s22 }
  0x3b   :  { %v411_v13 = vld [vmem:[#allocation7 + $0x18] sm:$0xff]   ;;  %v414_v16 = vld [vmem:[#allocation7 + $0x30] sm:$0xff]  }
  0x3c   :  { %v415_v17 = vld [vmem:[#allocation7 + $0x38] sm:$0xff]   ;;  %p493_p13 = por %p492_p12, %p491_p11 }
  0x3d   :  { %352 = vmatpush3.bf16.msra.mxu0 %v400_v2  ;;  %372 = vmatpush3.bf16.msra.mxu1 %v409_v11 }
  0x3e   :  { %353 = vmatprep.subr.bf16.mxu0 %v519_v0  ;;  %373 = vmatprep.subr.bf16.mxu1 %v519_v0  ;;  %p494_p0 = pnand %p493_p13, %p487_p10 }
  0x41   :  { %354 = vmatpush3.bf16.msra.mxu0 %v401_v3  ;;  %374 = vmatpush3.bf16.msra.mxu1 %v410_v12 }
  0x42   :  { %355 = vmatprep.subr.bf16.mxu0 %v519_v0  ;;  %375 = vmatprep.subr.bf16.mxu1 %v519_v0 }
  0x45   :  { %356 = vmatpush3.bf16.msra.mxu0 %v402_v4  ;;  %376 = vmatpush3.bf16.msra.mxu1 %v411_v13 }
  0x46   :  { %357 = vmatprep.subr.bf16.mxu0 %v519_v0  ;;  %377 = vmatprep.subr.bf16.mxu1 %v519_v0 }
  0x49   :  { %358 = vmatpush3.bf16.msra.mxu0 %v403_v6  ;;  %378 = vmatpush3.bf16.msra.mxu1 %v412_v14 }
  0x4a   :  { %359 = vmatprep.subr.bf16.mxu0 %v519_v0  ;;  %379 = vmatprep.subr.bf16.mxu1 %v519_v0 }
  0x4d   :  { %360 = vmatpush3.bf16.msra.mxu0 %v404_v7  ;;  %380 = vmatpush3.bf16.msra.mxu1 %v413_v15 }
  0x4e   :  { %361 = vmatprep.subr.bf16.mxu0 %v519_v0  ;;  %381 = vmatprep.subr.bf16.mxu1 %v519_v0 }
  0x51   :  { %362 = vmatpush3.bf16.msra.mxu0 %v405_v8  ;;  %382 = vmatpush3.bf16.msra.mxu1 %v414_v16 }
  0x52   :  { %363 = vmatprep.subr.bf16.mxu0 %v519_v0  ;;  %383 = vmatprep.subr.bf16.mxu1 %v519_v0 }
  0x55   :  { %364 = vmatpush3.bf16.msra.mxu0 %v406_v9  ;;  %384 = vmatpush3.bf16.msra.mxu1 %v415_v17 }
  0x58   :  { %366 = vmatmul.mubr.bf16.vlgmr.msra.gmra.mrb[0].mxu0 %v407_v10 }
 0x12b   :  { %v163_v18 = vpop.f32.mrb[0].mxu0 }
 0x12c   :  { %v172_v19 = vmul.f32 0.044715, %v163_v18  ;;  %v367_v20 = vpop.f32.mrb[1].mxu0  ;;  %v170_v35 = vmul.f32 0.5, %v163_v18 }
 0x12d   :  { %v166_v21 = vpop.f32.mrb[2].mxu0 }
 0x12e   :  { %v174_v22 = vmul.f32 %v172_v19, %v163_v18  ;;  %v173_v23 = vmul.f32 0.044715, %v166_v21  ;;  %v368_v24 = vpop.f32.mrb[3].mxu0  ;;  %v171_v36 = vmul.f32 0.5, %v166_v21 }
 0x130   :  { %v176_v25 = vmul.f32 %v174_v22, %v163_v18  ;;  %v175_v26 = vmul.f32 %v173_v23, %v166_v21 }
 0x132   :  { %v178_v27 = vadd.f32 %v176_v25, %v163_v18  ;;  %v177_v28 = vmul.f32 %v175_v26, %v166_v21 }
 0x134   :  { %v180_v29 = vmul.f32 0.7978846, %v178_v27  ;;  %v179_v30 = vadd.f32 %v177_v28, %v166_v21 }
 0x136   :  { %416 = vtanh.f32 %v180_v29  ;;  %v181_v31 = vmul.f32 0.7978846, %v179_v30 }
 0x138   :  { %418 = vtanh.f32 %v181_v31 }
 0x140   :  { %v417_v32 = vpop.eup %416 }
 0x141   :  { %v184_v33 = vadd.f32 1.0, %v417_v32 }
 0x142   :  { %v419_v34 = vpop.eup %418 }
 0x143   :  { %v185_v37 = vadd.f32 1.0, %v419_v34  ;;  %v186_v38 = vmul.f32 %v184_v33, %v170_v35 }
 0x145   :  { %v187_v39 = vmul.f32 %v185_v37, %v171_v36 }
 0x147   :  { %v188_v40 = vpack.c.bf16 %v187_v39, %v186_v38 }
 0x149   :  { %386 = vmatmul.mubr.bf16.vlgmr.msra.gmra.mrb[0].mxu1 %v188_v40 }
 0x21c   :  { %v287_v41 = vpop.f32.mrb[0].mxu1 }
 0x21d   :  { %294 = vst [vmem:[#allocation8] sm:$0xff] %v287_v41  ;;  %v387_v42 = vpop.f32.mrb[1].mxu1 }
 0x21e   :  { %v290_v43 = vpop.f32.mrb[2].mxu1 }
 0x21f   :  { %295 = vst [vmem:[#allocation8 + $0x8] sm:$0xff] %v290_v43  ;;  %v388_v44 = vpop.f32.mrb[3].mxu1 }
 0x220   :  { %497 = shalt.err (!%p494_p0)
}
 0x221   :  { %s498_s25 = scalar_lea.hbm %s611_s3, 256 }
 0x222   :  { %p499_p1 = scmp.ne.s32.totalorder %s611_s3, %s498_s25  ;;  %p502_p2 = scmp.lt.u32.totalorder %s498_s25, %s611_s3 }
 0x224   :  { %p504_p3 = pnand %p502_p2, %p499_p1 }
 0x226   :  { %507 = shalt.err (!%p504_p3)
}
 0x227   :  { %s522_s30 = smov 128   ;;  %s523_s4 = smov 8  }
 0x228   :  { %307 = dma.vmem_to_hbm [thread:$0]  %s302_s21, 256, %s611_s3, [#allocation4], %s522_s30, %s522_s30, %s523_s4  }
 0x229   :  { %512 = dma.done.wait [#allocation4], 256  }
 0x22a   :  { %513 = vsyncadd [#allocation4], 4294967040 }
 0x22b   :  { %311 = vsyncpa [#allocation3], 1 }
 0x22c   :  { %312 = vsyncpa [#allocation6], 1 }
 0x22d   :  { %313 = vsyncpa [#allocation4], 1 }

</bundles_post_ra>
